<compile_context>
chip_gen: v7x
topology: tpu7x:2x2x1
jax: 0.10.0
libtpu: 0.0.40
codegen_flags: <defaults>
</compile_context>

<pallas_src>
import jax
import jax.numpy as jnp
from jax.experimental import pallas as pl
from jax.experimental.pallas import tpu as pltpu


def _make_kernel(inv_all: float, inv_col: float):
    """Build the kernel with the true-B normalizers baked in as constants."""

    def kernel(w_ref, out_ref, tgt_ref, res_ref, acc_ref):
        # w_ref   : (1, 3)   VMEM  static weight = base_scale * gaussian[0]
        # out_ref : (bt, 21) VMEM  prediction block
        # tgt_ref : (bt, 21) VMEM  target block
        # res_ref : (8,)     SMEM  [loss, ori, x, y, z, 0, 0, 0]
        # acc_ref : (4,)     SMEM  [sum_x, sum_y, sum_z, sum_weighted]
        step = pl.program_id(0)

        @pl.when(step == 0)
        def _init():
            acc_ref[0] = jnp.float32(0.0)
            acc_ref[1] = jnp.float32(0.0)
            acc_ref[2] = jnp.float32(0.0)
            acc_ref[3] = jnp.float32(0.0)

        o = out_ref[...]
        t = tgt_ref[...]
        loss = jnp.abs(o - t).astype(jnp.float32)            # (bt, 21)

        # ---- one-pass x/y/z column sums (ori_loss is derived from these) ----
        colsum = jnp.sum(loss, axis=0, keepdims=True)        # (1, 21)
        lane = jax.lax.broadcasted_iota(jnp.int32, (1, 21), 1)
        coord = lane % 3                                     # 0:x 1:y 2:z
        zero = jnp.float32(0.0)
        sx = jnp.sum(jnp.where(coord == 0, colsum, zero))
        sy = jnp.sum(jnp.where(coord == 1, colsum, zero))
        sz = jnp.sum(jnp.where(coord == 2, colsum, zero))

        # ---- per-batch dynamic factors (only waypoint 0 survives the mask) --
        tf32 = t.astype(jnp.float32)
        # is_updown: |z_wp0 - z_wp6| > 5  ->  z-scale 5
        dist = jnp.abs(tf32[:, 2:3] - tf32[:, 20:21])        # (bt, 1)
        ud = jnp.where(dist > 5.0, jnp.float32(5.0), jnp.float32(1.0))
        # is_turn: cos(wp0, wp1 - wp0) < 0.85  ->  xy-scale 5
        vec1 = tf32[:, 0:3]
        vec2 = tf32[:, 3:6] - vec1
        dot = jnp.sum(vec1 * vec2, axis=-1, keepdims=True)
        n1 = jnp.sqrt(jnp.sum(vec1 * vec1, axis=-1, keepdims=True))
        n2 = jnp.sqrt(jnp.sum(vec2 * vec2, axis=-1, keepdims=True))
        cos = dot / (n1 * n2 + 1e-6)
        turn = jnp.where(cos < 0.85, jnp.float32(5.0), jnp.float32(1.0))

        # ---- weighted loss: only 3 lanes per batch row are nonzero ----------
        w = w_ref[...]                                       # (1, 3)
        wsum = jnp.sum(
            turn * (loss[:, 0:1] * w[:, 0:1] + loss[:, 1:2] * w[:, 1:2])
            + ud * (loss[:, 2:3] * w[:, 2:3])
        )

        acc_ref[0] += sx
        acc_ref[1] += sy
        acc_ref[2] += sz
        acc_ref[3] += wsum

        @pl.when(step == pl.num_programs(0) - 1)
        def _finalize():
            sx_t = acc_ref[0]
            sy_t = acc_ref[1]
            sz_t = acc_ref[2]
            res_ref[0] = acc_ref[3] * inv_all                # weighted 'loss'
            res_ref[1] = (sx_t + sy_t + sz_t) * inv_all      # 'ori_loss'
            res_ref[2] = sx_t * inv_col                      # 'x_loss'
            res_ref[3] = sy_t * inv_col                      # 'y_loss'
            res_ref[4] = sz_t * inv_col                      # 'z_loss'
            res_ref[5] = jnp.float32(0.0)
            res_ref[6] = jnp.float32(0.0)
            res_ref[7] = jnp.float32(0.0)

    return kernel


def scale_l1_loss(output, target, scale=(1.0, 1.0, 1.0), block_b=8192):
    """Pallas implementation of ScaleL1Loss.forward.

    output, target: (B, 21) (or any shape reshapeable to (B, 21)).
    Returns a dict of float32 scalars matching the PyTorch module.
    """
    B = output.shape[0]
    output = output.reshape(B, 21)
    target = target.reshape(B, 21)

    # Static weight for the surviving waypoint-0 lanes:
    #   base_scale * gaussian_scale[0]  (gaussian built in bf16, like torch).
    gauss = jnp.exp(-0.5 * (jnp.arange(7, dtype=jnp.bfloat16) ** 2) / (1.5 ** 2))
    w = (jnp.asarray(scale, jnp.float32)
         * gauss[0].astype(jnp.float32)).reshape(1, 3)

    # Tile B; pad to a multiple of the block so tail rows are well-defined
    # zeros (they contribute nothing to any sum).
    if B <= block_b:
        bt, Bp = B, B
    else:
        bt = block_b                                   # multiple of 8
        Bp = ((B + bt - 1) // bt) * bt
        if Bp != B:
            pad = Bp - B
            output = jnp.pad(output, ((0, pad), (0, 0)))
            target = jnp.pad(target, ((0, pad), (0, 0)))
    num_blocks = Bp // bt

    inv_all = 1.0 / float(B * 21)                      # true B, not padded
    inv_col = 1.0 / float(B * 7)

    kernel = _make_kernel(inv_all, inv_col)

    res = pl.pallas_call(
        kernel,
        out_shape=jax.ShapeDtypeStruct((8,), jnp.float32),
        grid=(num_blocks,),
        in_specs=[
            pl.BlockSpec((1, 3), lambda i: (0, 0)),        # static weights
            pl.BlockSpec((bt, 21), lambda i: (i, 0)),      # output block
            pl.BlockSpec((bt, 21), lambda i: (i, 0)),      # target block
        ],
        out_specs=pl.BlockSpec(memory_space=pltpu.MemorySpace.SMEM),
        scratch_shapes=[pltpu.SMEM((4,), jnp.float32)],
        compiler_params=pltpu.CompilerParams(
            dimension_semantics=("arbitrary",),
            vmem_limit_bytes=32 * 1024 * 1024,
        ),
    )(w, output, target)

    return {
        "loss": res[0],
        "ori_loss": res[1],
        "x_loss": res[2],
        "y_loss": res[3],
        "z_loss": res[4],
    }


def _reference(output, target):
    """Pure-JAX reference mirroring the PyTorch forward (for sanity check)."""
    B = output.shape[0]
    out = output.reshape(B, 7, 3).astype(jnp.float32)
    tgt = target.reshape(B, 7, 3).astype(jnp.float32)

    base = jnp.ones((1, 1, 3), jnp.float32)

    dist = jnp.abs(tgt[:, 0, 2] - tgt[:, 6, 2])                        # (B,)
    updown = jnp.where(dist[:, None, None] > 5.0,
                       jnp.array([1.0, 1.0, 5.0]),
                       jnp.array([1.0, 1.0, 1.0]))                     # (B,1,3)

    vec1 = tgt[:, 0, :]
    vec2 = tgt[:, 1, :] - tgt[:, 0, :]
    cos = jnp.sum(vec1 * vec2, -1) / (
        jnp.linalg.norm(vec1, axis=-1) * jnp.linalg.norm(vec2, axis=-1) + 1e-6)
    turn = jnp.where(cos[:, None, None] < 0.85,
                     jnp.array([5.0, 5.0, 1.0]),
                     jnp.array([1.0, 1.0, 1.0]))                       # (B,1,3)

    x = jnp.arange(7, dtype=jnp.bfloat16)
    gauss = jnp.exp(-0.5 * x ** 2 / (1.5 ** 2)).astype(jnp.float32).reshape(1, 7, 1)

    mask = jnp.zeros((B, 7, 3), jnp.float32).at[:, 0, :].set(1.0)
    scale_full = base * updown * turn * gauss * mask

    loss = jnp.abs(out - tgt)
    return {
        "loss": jnp.mean(loss * scale_full),
        "ori_loss": jnp.mean(loss),
        "x_loss": jnp.mean(loss[:, :, 0]),
        "y_loss": jnp.mean(loss[:, :, 1]),
        "z_loss": jnp.mean(loss[:, :, 2]),
    }


if __name__ == "__main__":
    key = jax.random.PRNGKey(0)
    k1, k2, k3, k4 = jax.random.split(key, 4)

    # Case 1: small batch, single block. Scale target so both the "updown"
    # (>5 z-distance) and "turn" (cos < 0.85) branches get exercised.
    B1 = 2
    out1 = jax.random.normal(k1, (B1, 21), dtype=jnp.float32)
    tgt1 = jax.random.normal(k2, (B1, 21), dtype=jnp.float32) * 4.0
    res1 = jax.block_until_ready(scale_l1_loss(out1, tgt1))
    ref1 = _reference(out1, tgt1)
    for k in res1:
        assert jnp.allclose(res1[k], ref1[k], rtol=1e-5, atol=1e-5), (
            k, res1[k], ref1[k])

    # Case 2: multi-block grid with a padded tail (B=20, block_b=8 -> grid=3,
    # padded to 24 rows) to exercise the accumulator / tail handling.
    B2 = 20
    out2 = jax.random.normal(k3, (B2, 21), dtype=jnp.float32)
    tgt2 = jax.random.normal(k4, (B2, 21), dtype=jnp.float32) * 4.0
    res2 = jax.block_until_ready(scale_l1_loss(out2, tgt2, block_b=8))
    ref2 = _reference(out2, tgt2)
    for k in res2:
        assert jnp.allclose(res2[k], ref2[k], rtol=1e-5, atol=1e-5), (
            k, res2[k], ref2[k])

    print("KERNEL_OK")
</pallas_src>

<mosaic_0001>
module attributes {stable_mosaic.version = 11 : i64} {
  func.func @kernel(%arg0: i32, %arg1: memref<1x3xf32, #tpu.memory_space<vmem>>, %arg2: memref<2x21xf32, #tpu.memory_space<vmem>>, %arg3: memref<2x21xf32, #tpu.memory_space<vmem>>, %arg4: memref<8xf32, #tpu.memory_space<smem>>, %arg5: memref<4xf32, #tpu.memory_space<smem>>) attributes {dimension_semantics = [#tpu.dimension_semantics<arbitrary>], iteration_bounds = array<i64: 1>, scalar_prefetch = 0 : i64, scratch_operands = 1 : i64, tpu.core_type = #tpu.core_type<tc>, window_params = [{pipeline_mode = #tpu.pipeline_mode<synchronous>, transform_indices = @transform_0, window_bounds = array<i64: 1, 3>}, {transform_indices = @transform_1, window_bounds = array<i64: 2, 21>}, {transform_indices = @transform_2, window_bounds = array<i64: 2, 21>}, {transform_indices = @transform_3, window_bounds = array<i64: 8>}]} {
    %c0_i32 = arith.constant 0 : i32
    %0 = arith.cmpi eq, %arg0, %c0_i32 : i32
    %1 = arith.extui %0 : i1 to i32
    %c0_i32_0 = arith.constant 0 : i32
    %2 = arith.cmpi ne, %1, %c0_i32_0 : i32
    scf.if %2 {
      %cst_36 = arith.constant 0.000000e+00 : f32
      %c0_37 = arith.constant 0 : index
      %118 = memref.load %arg5[%c0_37] : memref<4xf32, #tpu.memory_space<smem>>
      memref.store %cst_36, %arg5[%c0_37] : memref<4xf32, #tpu.memory_space<smem>>
      %cst_38 = arith.constant 0.000000e+00 : f32
      %c1_39 = arith.constant 1 : index
      %119 = memref.load %arg5[%c1_39] : memref<4xf32, #tpu.memory_space<smem>>
      memref.store %cst_38, %arg5[%c1_39] : memref<4xf32, #tpu.memory_space<smem>>
      %cst_40 = arith.constant 0.000000e+00 : f32
      %c2_41 = arith.constant 2 : index
      %120 = memref.load %arg5[%c2_41] : memref<4xf32, #tpu.memory_space<smem>>
      memref.store %cst_40, %arg5[%c2_41] : memref<4xf32, #tpu.memory_space<smem>>
      %cst_42 = arith.constant 0.000000e+00 : f32
      %c3_43 = arith.constant 3 : index
      %121 = memref.load %arg5[%c3_43] : memref<4xf32, #tpu.memory_space<smem>>
      memref.store %cst_42, %arg5[%c3_43] : memref<4xf32, #tpu.memory_space<smem>>
    } else {
    }
    %c0 = arith.constant 0 : index
    %c0_1 = arith.constant 0 : index
    %3 = vector.load %arg2[%c0, %c0_1] : memref<2x21xf32, #tpu.memory_space<vmem>>, vector<2x21xf32>
    %c0_2 = arith.constant 0 : index
    %c0_3 = arith.constant 0 : index
    %4 = vector.load %arg3[%c0_2, %c0_3] : memref<2x21xf32, #tpu.memory_space<vmem>>, vector<2x21xf32>
    %5 = arith.subf %3, %4 : vector<2x21xf32>
    %6 = math.absf %5 : vector<2x21xf32>
    %cst = arith.constant dense<0.000000e+00> : vector<21xf32>
    %7 = vector.multi_reduction <add>, %6, %cst [0] : vector<2x21xf32> to vector<21xf32>
    %8 = vector.shape_cast %7 : vector<21xf32> to vector<1x21xf32>
    %9 = tpu.iota {dimensions = array<i32: 1>} : vector<1x21xi32>
    %c3_i32 = arith.constant 3 : i32
    %c0_i32_4 = arith.constant 0 : i32
    %10 = arith.cmpi eq, %c3_i32, %c0_i32_4 : i32
    %c1_i32 = arith.constant 1 : i32
    %11 = arith.select %10, %c1_i32, %c3_i32 : i32
    %12 = vector.broadcast %11 : i32 to vector<1x21xi32>
    %13 = arith.remsi %9, %12 : vector<1x21xi32>
    %c0_i32_5 = arith.constant 0 : i32
    %14 = vector.broadcast %c0_i32_5 : i32 to vector<1x21xi32>
    %15 = arith.cmpi ne, %13, %14 : vector<1x21xi32>
    %c0_i32_6 = arith.constant 0 : i32
    %16 = vector.broadcast %c0_i32_6 : i32 to vector<1x21xi32>
    %17 = arith.cmpi slt, %13, %16 : vector<1x21xi32>
    %c0_i32_7 = arith.constant 0 : i32
    %18 = arith.cmpi slt, %11, %c0_i32_7 : i32
    %19 = vector.broadcast %18 : i1 to vector<1x21xi1>
    %20 = vector.broadcast %19 : vector<1x21xi1> to vector<1x21xi1>
    %21 = arith.xori %17, %20 : vector<1x21xi1>
    %22 = arith.andi %21, %15 : vector<1x21xi1>
    %23 = vector.broadcast %11 : i32 to vector<1x21xi32>
    %24 = arith.addi %13, %23 : vector<1x21xi32>
    %25 = arith.select %22, %24, %13 : vector<1x21xi1>, vector<1x21xi32>
    %c0_i32_8 = arith.constant 0 : i32
    %26 = vector.broadcast %c0_i32_8 : i32 to vector<1x21xi32>
    %27 = arith.cmpi eq, %25, %26 : vector<1x21xi32>
    %cst_9 = arith.constant 0.000000e+00 : f32
    %28 = vector.broadcast %cst_9 : f32 to vector<1x21xf32>
    %29 = arith.select %27, %8, %28 : vector<1x21xi1>, vector<1x21xf32>
    %30 = vector.shape_cast %29 : vector<1x21xf32> to vector<1x1x21xf32>
    %cst_10 = arith.constant dense<0.000000e+00> : vector<1xf32>
    %31 = vector.multi_reduction <add>, %30, %cst_10 [1, 2] : vector<1x1x21xf32> to vector<1xf32>
    %32 = vector.shape_cast %31 : vector<1xf32> to vector<1x1x1xf32>
    %33 = vector.extract %32[0, 0, 0] : f32 from vector<1x1x1xf32>
    %c1_i32_11 = arith.constant 1 : i32
    %34 = vector.broadcast %c1_i32_11 : i32 to vector<1x21xi32>
    %35 = arith.cmpi eq, %25, %34 : vector<1x21xi32>
    %cst_12 = arith.constant 0.000000e+00 : f32
    %36 = vector.broadcast %cst_12 : f32 to vector<1x21xf32>
    %37 = arith.select %35, %8, %36 : vector<1x21xi1>, vector<1x21xf32>
    %38 = vector.shape_cast %37 : vector<1x21xf32> to vector<1x1x21xf32>
    %cst_13 = arith.constant dense<0.000000e+00> : vector<1xf32>
    %39 = vector.multi_reduction <add>, %38, %cst_13 [1, 2] : vector<1x1x21xf32> to vector<1xf32>
    %40 = vector.shape_cast %39 : vector<1xf32> to vector<1x1x1xf32>
    %41 = vector.extract %40[0, 0, 0] : f32 from vector<1x1x1xf32>
    %c2_i32 = arith.constant 2 : i32
    %42 = vector.broadcast %c2_i32 : i32 to vector<1x21xi32>
    %43 = arith.cmpi eq, %25, %42 : vector<1x21xi32>
    %cst_14 = arith.constant 0.000000e+00 : f32
    %44 = vector.broadcast %cst_14 : f32 to vector<1x21xf32>
    %45 = arith.select %43, %8, %44 : vector<1x21xi1>, vector<1x21xf32>
    %46 = vector.shape_cast %45 : vector<1x21xf32> to vector<1x1x21xf32>
    %cst_15 = arith.constant dense<0.000000e+00> : vector<1xf32>
    %47 = vector.multi_reduction <add>, %46, %cst_15 [1, 2] : vector<1x1x21xf32> to vector<1xf32>
    %48 = vector.shape_cast %47 : vector<1xf32> to vector<1x1x1xf32>
    %49 = vector.extract %48[0, 0, 0] : f32 from vector<1x1x1xf32>
    %50 = vector.extract_strided_slice %4 {offsets = [0, 2], sizes = [2, 1], strides = [1, 1]} : vector<2x21xf32> to vector<2x1xf32>
    %51 = vector.extract_strided_slice %4 {offsets = [0, 20], sizes = [2, 1], strides = [1, 1]} : vector<2x21xf32> to vector<2x1xf32>
    %52 = arith.subf %50, %51 : vector<2x1xf32>
    %53 = math.absf %52 : vector<2x1xf32>
    %cst_16 = arith.constant 5.000000e+00 : f32
    %54 = vector.broadcast %cst_16 : f32 to vector<2x1xf32>
    %55 = arith.cmpf ogt, %53, %54 : vector<2x1xf32>
    %cst_17 = arith.constant 5.000000e+00 : f32
    %cst_18 = arith.constant 1.000000e+00 : f32
    %56 = vector.broadcast %cst_17 : f32 to vector<2x1xf32>
    %57 = vector.broadcast %cst_18 : f32 to vector<2x1xf32>
    %58 = arith.select %55, %56, %57 : vector<2x1xi1>, vector<2x1xf32>
    %59 = vector.extract_strided_slice %4 {offsets = [0, 0], sizes = [2, 3], strides = [1, 1]} : vector<2x21xf32> to vector<2x3xf32>
    %60 = vector.extract_strided_slice %4 {offsets = [0, 3], sizes = [2, 3], strides = [1, 1]} : vector<2x21xf32> to vector<2x3xf32>
    %61 = arith.subf %60, %59 : vector<2x3xf32>
    %62 = arith.mulf %59, %61 : vector<2x3xf32>
    %cst_19 = arith.constant dense<0.000000e+00> : vector<2xf32>
    %63 = vector.multi_reduction <add>, %62, %cst_19 [1] : vector<2x3xf32> to vector<2xf32>
    %64 = vector.shape_cast %63 : vector<2xf32> to vector<2x1xf32>
    %65 = arith.mulf %59, %59 : vector<2x3xf32>
    %cst_20 = arith.constant dense<0.000000e+00> : vector<2xf32>
    %66 = vector.multi_reduction <add>, %65, %cst_20 [1] : vector<2x3xf32> to vector<2xf32>
    %67 = vector.shape_cast %66 : vector<2xf32> to vector<2x1xf32>
    %68 = math.sqrt %67 : vector<2x1xf32>
    %69 = arith.mulf %61, %61 : vector<2x3xf32>
    %cst_21 = arith.constant dense<0.000000e+00> : vector<2xf32>
    %70 = vector.multi_reduction <add>, %69, %cst_21 [1] : vector<2x3xf32> to vector<2xf32>
    %71 = vector.shape_cast %70 : vector<2xf32> to vector<2x1xf32>
    %72 = math.sqrt %71 : vector<2x1xf32>
    %73 = arith.mulf %68, %72 : vector<2x1xf32>
    %cst_22 = arith.constant 9.99999997E-7 : f32
    %74 = vector.broadcast %cst_22 : f32 to vector<2x1xf32>
    %75 = arith.addf %73, %74 : vector<2x1xf32>
    %76 = arith.divf %64, %75 : vector<2x1xf32>
    %cst_23 = arith.constant 8.500000e-01 : f32
    %77 = vector.broadcast %cst_23 : f32 to vector<2x1xf32>
    %78 = arith.cmpf olt, %76, %77 : vector<2x1xf32>
    %cst_24 = arith.constant 5.000000e+00 : f32
    %cst_25 = arith.constant 1.000000e+00 : f32
    %79 = vector.broadcast %cst_24 : f32 to vector<2x1xf32>
    %80 = vector.broadcast %cst_25 : f32 to vector<2x1xf32>
    %81 = arith.select %78, %79, %80 : vector<2x1xi1>, vector<2x1xf32>
    %c0_26 = arith.constant 0 : index
    %c0_27 = arith.constant 0 : index
    %82 = vector.load %arg1[%c0_26, %c0_27] : memref<1x3xf32, #tpu.memory_space<vmem>>, vector<1x3xf32>
    %83 = vector.extract_strided_slice %6 {offsets = [0, 0], sizes = [2, 1], strides = [1, 1]} : vector<2x21xf32> to vector<2x1xf32>
    %84 = vector.extract_strided_slice %82 {offsets = [0, 0], sizes = [1, 1], strides = [1, 1]} : vector<1x3xf32> to vector<1x1xf32>
    %85 = vector.broadcast %84 : vector<1x1xf32> to vector<2x1xf32>
    %86 = arith.mulf %83, %85 : vector<2x1xf32>
    %87 = vector.extract_strided_slice %6 {offsets = [0, 1], sizes = [2, 1], strides = [1, 1]} : vector<2x21xf32> to vector<2x1xf32>
    %88 = vector.extract_strided_slice %82 {offsets = [0, 1], sizes = [1, 1], strides = [1, 1]} : vector<1x3xf32> to vector<1x1xf32>
    %89 = vector.broadcast %88 : vector<1x1xf32> to vector<2x1xf32>
    %90 = arith.mulf %87, %89 : vector<2x1xf32>
    %91 = arith.addf %86, %90 : vector<2x1xf32>
    %92 = arith.mulf %81, %91 : vector<2x1xf32>
    %93 = vector.extract_strided_slice %6 {offsets = [0, 2], sizes = [2, 1], strides = [1, 1]} : vector<2x21xf32> to vector<2x1xf32>
    %94 = vector.extract_strided_slice %82 {offsets = [0, 2], sizes = [1, 1], strides = [1, 1]} : vector<1x3xf32> to vector<1x1xf32>
    %95 = vector.broadcast %94 : vector<1x1xf32> to vector<2x1xf32>
    %96 = arith.mulf %93, %95 : vector<2x1xf32>
    %97 = arith.mulf %58, %96 : vector<2x1xf32>
    %98 = arith.addf %92, %97 : vector<2x1xf32>
    %99 = vector.shape_cast %98 : vector<2x1xf32> to vector<1x2x1xf32>
    %cst_28 = arith.constant dense<0.000000e+00> : vector<1xf32>
    %100 = vector.multi_reduction <add>, %99, %cst_28 [1, 2] : vector<1x2x1xf32> to vector<1xf32>
    %101 = vector.shape_cast %100 : vector<1xf32> to vector<1x1x1xf32>
    %102 = vector.extract %101[0, 0, 0] : f32 from vector<1x1x1xf32>
    %c0_29 = arith.constant 0 : index
    %103 = memref.load %arg5[%c0_29] : memref<4xf32, #tpu.memory_space<smem>>
    %104 = arith.addf %103, %33 : f32
    %c0_30 = arith.constant 0 : index
    %105 = memref.load %arg5[%c0_30] : memref<4xf32, #tpu.memory_space<smem>>
    memref.store %104, %arg5[%c0_30] : memref<4xf32, #tpu.memory_space<smem>>
    %c1 = arith.constant 1 : index
    %106 = memref.load %arg5[%c1] : memref<4xf32, #tpu.memory_space<smem>>
    %107 = arith.addf %106, %41 : f32
    %c1_31 = arith.constant 1 : index
    %108 = memref.load %arg5[%c1_31] : memref<4xf32, #tpu.memory_space<smem>>
    memref.store %107, %arg5[%c1_31] : memref<4xf32, #tpu.memory_space<smem>>
    %c2 = arith.constant 2 : index
    %109 = memref.load %arg5[%c2] : memref<4xf32, #tpu.memory_space<smem>>
    %110 = arith.addf %109, %49 : f32
    %c2_32 = arith.constant 2 : index
    %111 = memref.load %arg5[%c2_32] : memref<4xf32, #tpu.memory_space<smem>>
    memref.store %110, %arg5[%c2_32] : memref<4xf32, #tpu.memory_space<smem>>
    %c3 = arith.constant 3 : index
    %112 = memref.load %arg5[%c3] : memref<4xf32, #tpu.memory_space<smem>>
    %113 = arith.addf %112, %102 : f32
    %c3_33 = arith.constant 3 : index
    %114 = memref.load %arg5[%c3_33] : memref<4xf32, #tpu.memory_space<smem>>
    memref.store %113, %arg5[%c3_33] : memref<4xf32, #tpu.memory_space<smem>>
    %c0_i32_34 = arith.constant 0 : i32
    %115 = arith.cmpi eq, %arg0, %c0_i32_34 : i32
    %116 = arith.extui %115 : i1 to i32
    %c0_i32_35 = arith.constant 0 : i32
    %117 = arith.cmpi ne, %116, %c0_i32_35 : i32
    scf.if %117 {
      %c0_36 = arith.constant 0 : index
      %118 = memref.load %arg5[%c0_36] : memref<4xf32, #tpu.memory_space<smem>>
      %c1_37 = arith.constant 1 : index
      %119 = memref.load %arg5[%c1_37] : memref<4xf32, #tpu.memory_space<smem>>
      %c2_38 = arith.constant 2 : index
      %120 = memref.load %arg5[%c2_38] : memref<4xf32, #tpu.memory_space<smem>>
      %c3_39 = arith.constant 3 : index
      %121 = memref.load %arg5[%c3_39] : memref<4xf32, #tpu.memory_space<smem>>
      %cst_40 = arith.constant 0.0238095243 : f32
      %122 = arith.mulf %121, %cst_40 : f32
      %c0_41 = arith.constant 0 : index
      %123 = memref.load %arg4[%c0_41] : memref<8xf32, #tpu.memory_space<smem>>
      memref.store %122, %arg4[%c0_41] : memref<8xf32, #tpu.memory_space<smem>>
      %124 = arith.addf %118, %119 : f32
      %125 = arith.addf %124, %120 : f32
      %cst_42 = arith.constant 0.0238095243 : f32
      %126 = arith.mulf %125, %cst_42 : f32
      %c1_43 = arith.constant 1 : index
      %127 = memref.load %arg4[%c1_43] : memref<8xf32, #tpu.memory_space<smem>>
      memref.store %126, %arg4[%c1_43] : memref<8xf32, #tpu.memory_space<smem>>
      %cst_44 = arith.constant 0.0714285746 : f32
      %128 = arith.mulf %118, %cst_44 : f32
      %c2_45 = arith.constant 2 : index
      %129 = memref.load %arg4[%c2_45] : memref<8xf32, #tpu.memory_space<smem>>
      memref.store %128, %arg4[%c2_45] : memref<8xf32, #tpu.memory_space<smem>>
      %cst_46 = arith.constant 0.0714285746 : f32
      %130 = arith.mulf %119, %cst_46 : f32
      %c3_47 = arith.constant 3 : index
      %131 = memref.load %arg4[%c3_47] : memref<8xf32, #tpu.memory_space<smem>>
      memref.store %130, %arg4[%c3_47] : memref<8xf32, #tpu.memory_space<smem>>
      %cst_48 = arith.constant 0.0714285746 : f32
      %132 = arith.mulf %120, %cst_48 : f32
      %c4 = arith.constant 4 : index
      %133 = memref.load %arg4[%c4] : memref<8xf32, #tpu.memory_space<smem>>
      memref.store %132, %arg4[%c4] : memref<8xf32, #tpu.memory_space<smem>>
      %cst_49 = arith.constant 0.000000e+00 : f32
      %c5 = arith.constant 5 : index
      %134 = memref.load %arg4[%c5] : memref<8xf32, #tpu.memory_space<smem>>
      memref.store %cst_49, %arg4[%c5] : memref<8xf32, #tpu.memory_space<smem>>
      %cst_50 = arith.constant 0.000000e+00 : f32
      %c6 = arith.constant 6 : index
      %135 = memref.load %arg4[%c6] : memref<8xf32, #tpu.memory_space<smem>>
      memref.store %cst_50, %arg4[%c6] : memref<8xf32, #tpu.memory_space<smem>>
      %cst_51 = arith.constant 0.000000e+00 : f32
      %c7 = arith.constant 7 : index
      %136 = memref.load %arg4[%c7] : memref<8xf32, #tpu.memory_space<smem>>
      memref.store %cst_51, %arg4[%c7] : memref<8xf32, #tpu.memory_space<smem>>
    } else {
    }
    return
  }
  func.func @transform_0(%arg0: i32) -> (i32, i32) {
    %c0_i32 = arith.constant 0 : i32
    %c0_i32_0 = arith.constant 0 : i32
    %c0_i32_1 = arith.constant 0 : i32
    return %c0_i32, %c0_i32_0 : i32, i32
  }
  func.func @transform_1(%arg0: i32) -> (i32, i32) {
    %c0_i32 = arith.constant 0 : i32
    %c0_i32_0 = arith.constant 0 : i32
    return %arg0, %c0_i32 : i32, i32
  }
  func.func @transform_2(%arg0: i32) -> (i32, i32) {
    %c0_i32 = arith.constant 0 : i32
    %c0_i32_0 = arith.constant 0 : i32
    return %arg0, %c0_i32 : i32, i32
  }
  func.func @transform_3(%arg0: i32) -> i32 {
    %c0_i32 = arith.constant 0 : i32
    %c0_i32_0 = arith.constant 0 : i32
    return %c0_i32 : i32
  }
}

</mosaic_0001>

<bundles_post_ra>
// kernel: tpu_custom_call.1
= control target key start
LH: loop header
LB: loop body
LE: loop exit
PB: predicated region body
PF: predicated region fallthrough
CT: control target
= control target key end

     0   :  { %8 = vsyncpa [#allocation4], 0  ;;  %s388_s0 = inlined_call_operand.hbm [shape: f32[1,3], index: 0, kind: input, shape index: {}]   ;;  %s389_s1 = inlined_call_operand.vmem [shape: f32[2,21], index: 1, kind: input, shape index: {}]   ;;  %s390_s2 = inlined_call_operand.vmem [shape: f32[2,21], index: 2, kind: input, shape index: {}]   ;;  %s391_s3 = inlined_call_operand.hbm [shape: f32[8], index: 3, kind: output, shape index: {}]  }
   0x1   :  { %9 = vsyncpa [#allocation5], 0  ;;  %s318_s12 = smov [#allocation3]   ;;  %s282_s16 = scalar_lea.hbm %s388_s0, 16 }
   0x2   :  { %s16_s13 = sshll.u32 %s318_s12, 4  ;;  %p283_p0 = scmp.ne.s32.totalorder %s388_s0, %s282_s16  ;;  %s17_s13 = int_to_ptr.vmem [resolvable:$true] %s16_s13 }
   0x3   :  { %p286_p1 = scmp.lt.u32.totalorder %s282_s16, %s388_s0 }
   0x5   :  { %p288_p2 = pnand %p286_p1, %p283_p0 }
   0x7   :  { %291 = shalt.err (!%p288_p2)
}
   0x8   :  { %s292_s21 = scalar_lea.vmem %s17_s13, 16  ;;  %s296_s22 = scalar_lea.vmem %s17_s13, 32 }
   0x9   :  { %p293_p3 = scmp.ne.s32.totalorder %s17_s13, %s292_s21  ;;  %p297_p4 = scmp.lt.s32.totalorder %s17_s13, %s17_s13 }
   0xa   :  { %p298_p5 = scmp.lt.s32.totalorder %s296_s22, %s292_s21 }
   0xc   :  { %p299_p6 = por %p298_p5, %p297_p4 }
   0xe   :  { %p300_p7 = pnand %p299_p6, %p293_p3 }
  0x10   :  { %303 = shalt.err (!%p300_p7)
}
  0x11   :  { %19 = dma.hbm_to_vmem [thread:$0]  %s388_s0, 16, %s17_s13, [#allocation4]  }
  0x12   :  { %314 = dma.done.wait [#allocation4], 16  }
  0x13   :  { %315 = vsyncadd [#allocation4], 4294967280  ;;  %v40_v0 = vld [vmem:[%s390_s2] sm:$0x3]  ;;  %s319_s27 = smov 3   ;;  %s320_s28 = smov 125   ;;  %v51_v22 = vlaneseq }
  0x14   :  { %114 = vrot.lane.b32.xlu0 %v40_v0, %s319_s27  ;;  %s321_s29 = smov 110   ;;  %v127_v4 = vmul.f32 %v40_v0, %v40_v0  ;;  %vm123_vm0 = vcmask 17408   ;;  %v39_v12 = vld [vmem:[%s389_s1] sm:$0x3]  ;;  %v250_v17 = vld [vmem:[#allocation3] ss:$0 sm:$0xff] }
  0x15   :  { %v41_v14 = vsub.f32 %v39_v12, %v40_v0  ;;  %v322_v18 = vmov 1.0   ;;  %s323_s30 = smov 126   ;;  %v52_v23 = vand.u32 127, %v51_v22  ;;  %s324_s4 = smov 127   ;;  %vm43_vm2 = vcmask 164864  }
  0x16   :  { %v128_v5 = vsel %vm123_vm0, %v127_v4, 0.0  ;;  %vm71_vm8 = vcmask 163840   ;;  %vm179_vm15 = vcmask 1024   ;;  %s325_s12 = smov 0.0   ;;  %s304_s18 = scalar_lea.hbm %s391_s3, 16 }
  0x17   :  { %v42_v16 = vand.u32 2147483647, %v41_v14  ;;  %v370_v24 = vmul.u32.u64.low 2863311531, %v52_v23  ;;  %v371_v25 = vmul.u32.u64.high 2863311531, %v52_v23, %v370_v24  ;;  %231 = sst [smem:[#allocation6 + $0x5]] %s325_s12  ;;  %p305_p8 = scmp.ne.s32.totalorder %s391_s3, %s304_s18 }
  0x18   :  { %233 = sst [smem:[#allocation6 + $0x6]] %s325_s12  ;;  %p308_p9 = scmp.lt.u32.totalorder %s304_s18, %s391_s3 }
  0x19   :  { %v366_v20 = vmul.f32 %v250_v17, %v42_v16  ;;  %v44_v26 = vsel %vm43_vm2, %v42_v16, 0.0  ;;  %v59_v29 = vshrl.u32 %v371_v25, 1  ;;  %235 = sst [smem:[#allocation6 + $0x7]] %s325_s12 }
  0x1a   :  { %v45_v27 = vrot.slane %v44_v26, 4  ;;  %p310_p10 = pnand %p308_p9, %p305_p8 }
  0x1b   :  { %v60_v30 = vmul.u32 3, %v59_v29 }
  0x1c   :  { %v46_v28 = vadd.f32 %v45_v27, %v44_v26 }
  0x1d   :  { %v61_v32 = vsub.s32 %v52_v23, %v60_v30 }
  0x1e   :  { %v47_v31 = vrot.slane %v46_v28, 2 }
  0x1f   :  { %vm64_vm3 = vcmp.ne.s32.totalorder %v61_v32, 0  ;;  %vm65_vm4 = vcmp.lt.s32.totalorder %v61_v32, 0  ;;  %v67_v34 = vadd.s32 3, %v61_v32 }
  0x20   :  { %v48_v33 = vadd.f32 %v47_v31, %v46_v28  ;;  %vm66_vm5 = vmand %vm65_vm4, %vm64_vm3 }
  0x21   :  { %v68_v36 = vsel %vm66_vm5, %v67_v34, %v61_v32 }
  0x22   :  { %v49_v35 = vrot.slane %v48_v33, 1  ;;  %vm82_vm6 = vcmp.eq.s32.totalorder %v68_v36, 1  ;;  %vm69_vm7 = vcmp.eq.s32.totalorder %v68_v36, 0  ;;  %vm94_vm9 = vcmp.eq.s32.totalorder %v68_v36, 2 }
  0x24   :  { %v50_v37 = vadd.f32 %v49_v35, %v48_v33 }
  0x26   :  { %v83_v38 = vsel %vm82_vm6, %v50_v37, 0.0  ;;  %v70_v39 = vsel %vm69_vm7, %v50_v37, 0.0  ;;  %v95_v42 = vsel %vm94_vm9, %v50_v37, 0.0 }
  0x27   :  { %v84_v40 = vsel %vm71_vm8, %v83_v38, 0.0  ;;  %v72_v41 = vsel %vm71_vm8, %v70_v39, 0.0  ;;  %v96_v43 = vsel %vm71_vm8, %v95_v42, 0.0 }
  0x86   :  { %v115_v1 = vpop.permute.xlu0 %114 }
  0x87   :  { %v117_v2 = vsub.f32 %v40_v0, %v115_v1 }
  0x89   :  { %v138_v3 = vmul.f32 %v117_v2, %v117_v2  ;;  %119 = vrot.lane.b32.xlu1 %v117_v2, %s320_s28 }
  0x8b   :  { %140 = vrot.lane.b32.xlu0 %v138_v3, %s320_s28 }
  0x8d   :  { %107 = vrot.lane.b32.xlu1 %v40_v0, %s321_s29 }
  0xaa   :  { %129 = vadd.xlane.f32.xlu0 %v128_v5 }
  0xfb   :  { %v120_v6 = vpop.permute.xlu1 %119 }
  0xfc   :  { %v122_v7 = vmul.f32 %v120_v6, %v40_v0 }
  0xfd   :  { %v141_v8 = vpop.permute.xlu0 %140 }
  0xfe   :  { %v143_v9 = vsel %vm123_vm0, %v141_v8, 0.0  ;;  %v124_v10 = vsel %vm123_vm0, %v122_v7, 0.0 }
  0xff   :  { %144 = vadd.xlane.f32.xlu1 %v143_v9  ;;  %125 = vadd.xlane.f32.xlu0 %v124_v10  ;;  %v108_v11 = vpop.permute.xlu1 %107 }
 0x100   :  { %v110_v13 = vsub.f32 %v40_v0, %v108_v11 }
 0x102   :  { %v111_v15 = vand.u32 2147483647, %v110_v13 }
 0x104   :  { %vm112_vm1 = vcmp.gt.f32.partialorder %v111_v15, 5.0 }
 0x105   :  { %v113_v19 = vsel %vm112_vm1, 5.0, %v322_v18 }
 0x106   :  { %v173_v21 = vmul.f32 %v366_v20, %v113_v19 }
 0x110   :  { %175 = vrot.lane.b32.xlu1 %v173_v21, %s323_s30 }
 0x115   :  { %168 = vrot.lane.b32.xlu0 %v366_v20, %s324_s4 }
 0x134   :  { %85 = vadd.xlane.f32.xlu0 %v84_v40  ;;  %73 = vadd.xlane.f32.xlu1 %v72_v41 }
 0x137   :  { %v130_v44 = vpop.xlane.xlu0 %129 }
 0x138   :  { %97 = vadd.xlane.f32.xlu0 %v96_v43  ;;  %276 = vrsqrt.f32 %v130_v44  ;;  %vm133_vm10 = vcmp.eq.f32.partialorder %v130_v44, inf  ;;  %v136_v49 = vand.u32 2147483648, %v130_v44  ;;  %vm135_vm11 = vcmp.eq.f32.partialorder %v130_v44, 0.0 }
 0x142   :  { %v277_v46 = vpop.eup %276 }
 0x143   :  { %v132_v47 = vmul.f32 %v277_v46, %v130_v44 }
 0x145   :  { %v134_v50 = vsel %vm133_vm10, %v130_v44, %v132_v47 }
 0x146   :  { %v137_v54 = vsel %vm135_vm11, %v136_v49, %v134_v50 }
 0x18c   :  { %v145_v45 = vpop.xlane.xlu1 %144  ;;  %v126_v58 = vpop.xlane.xlu0 %125 }
 0x18d   :  { %278 = vrsqrt.f32 %v145_v45  ;;  %vm148_vm12 = vcmp.eq.f32.partialorder %v145_v45, inf  ;;  %v151_v52 = vand.u32 2147483648, %v145_v45  ;;  %vm150_vm13 = vcmp.eq.f32.partialorder %v145_v45, 0.0 }
 0x190   :  { %v169_v59 = vpop.permute.xlu0 %168  ;;  %v176_v0 = vpop.permute.xlu1 %175 }
 0x191   :  { %v171_v62 = vadd.f32 %v169_v59, %v366_v20 }
 0x197   :  { %v279_v48 = vpop.eup %278 }
 0x198   :  { %v147_v51 = vmul.f32 %v279_v48, %v145_v45 }
 0x19a   :  { %v149_v53 = vsel %vm148_vm12, %v145_v45, %v147_v51 }
 0x19b   :  { %v152_v55 = vsel %vm150_vm13, %v151_v52, %v149_v53 }
 0x19c   :  { %v153_v56 = vmul.f32 %v152_v55, %v137_v54 }
 0x19e   :  { %v154_v57 = vadd.f32 1e-06, %v153_v56 }
 0x1a0   :  { %280 = vrcp.f32 %v154_v57 }
 0x1aa   :  { %v281_v60 = vpop.eup %280 }
 0x1ab   :  { %v156_v61 = vmul.f32 %v281_v60, %v126_v58 }
 0x1ad   :  { %vm157_vm14 = vcmp.lt.f32.partialorder %v156_v61, 0.85 }
 0x1ae   :  { %v158_v63 = vsel %vm157_vm14, 5.0, %v322_v18 }
 0x1af   :  { %v172_v1 = vmul.f32 %v171_v62, %v158_v63 }
 0x1b1   :  { %v178_v2 = vadd.f32 %v176_v0, %v172_v1 }
 0x1b3   :  { %v180_v3 = vsel %vm179_vm15, %v178_v2, 0.0 }
 0x1b4   :  { %181 = vadd.xlane.f32.xlu1 %v180_v3 }
 0x1c1   :  { %v86_v4 = vpop.xlane.xlu0 %85  ;;  %v74_v5 = vpop.xlane.xlu1 %73 }
 0x1c2   :  { %v87_v6 = vrot.slane %v86_v4, 4  ;;  %v75_v7 = vrot.slane %v74_v5, 4 }
 0x1c4   :  { %v88_v8 = vadd.f32 %v87_v6, %v86_v4  ;;  %v76_v9 = vadd.f32 %v75_v7, %v74_v5 }
 0x1c5   :  { %v98_v10 = vpop.xlane.xlu0 %97 }
 0x1c6   :  { %v89_v11 = vrot.slane %v88_v8, 2  ;;  %v77_v12 = vrot.slane %v76_v9, 2  ;;  %v99_v13 = vrot.slane %v98_v10, 4 }
 0x1c8   :  { %v100_v14 = vadd.f32 %v99_v13, %v98_v10  ;;  %v78_v15 = vadd.f32 %v77_v12, %v76_v9  ;;  %v90_v16 = vadd.f32 %v89_v11, %v88_v8 }
 0x1ca   :  { %v101_v17 = vrot.slane %v100_v14, 2  ;;  %v79_v18 = vrot.slane %v78_v15, 1  ;;  %v91_v19 = vrot.slane %v90_v16, 1 }
 0x1cc   :  { %v102_v20 = vadd.f32 %v101_v17, %v100_v14  ;;  %v80_v21 = vadd.f32 %v79_v18, %v78_v15  ;;  %v92_v22 = vadd.f32 %v91_v19, %v90_v16 }
 0x1ce   :  { %259 = vpush %v80_v21  ;;  %v103_v23 = vrot.slane %v102_v20, 1 }
 0x1cf   :  { %261 = vpush %v92_v22 }
 0x1d0   :  { %v104_v24 = vadd.f32 %v103_v23, %v102_v20 }
 0x1d2   :  { %263 = vpush %v104_v24 }
 0x1ff   :  { %s260_s1 = spop %259 }
 0x200   :  { %s221_s5 = smul.f32 0.071428575, %s260_s1  ;;  %s262_s6 = spop %261 }
 0x201   :  { %s216_s7 = sadd.f32 %s262_s6, %s260_s1  ;;  %s224_s8 = smul.f32 0.071428575, %s262_s6 }
 0x202   :  { %223 = sst [smem:[#allocation6 + $0x2]] %s221_s5 }
 0x203   :  { %226 = sst [smem:[#allocation6 + $0x3]] %s224_s8  ;;  %s264_s9 = spop %263 }
 0x204   :  { %s217_s10 = sadd.f32 %s264_s9, %s216_s7  ;;  %s227_s11 = smul.f32 0.071428575, %s264_s9 }
 0x206   :  { %s218_s13 = smul.f32 0.023809524, %s217_s10  ;;  %229 = sst [smem:[#allocation6 + $0x4]] %s227_s11 }
 0x208   :  { %220 = sst [smem:[#allocation6 + $0x1]] %s218_s13 }
 0x241   :  { %v182_v25 = vpop.xlane.xlu1 %181 }
 0x242   :  { %v183_v26 = vrot.slane %v182_v25, 4 }
 0x244   :  { %v184_v27 = vadd.f32 %v183_v26, %v182_v25 }
 0x246   :  { %v185_v28 = vrot.slane %v184_v27, 2 }
 0x248   :  { %v186_v29 = vadd.f32 %v185_v28, %v184_v27 }
 0x24a   :  { %v187_v30 = vrot.slane %v186_v29, 1 }
 0x24c   :  { %v188_v31 = vadd.f32 %v187_v30, %v186_v29 }
 0x24e   :  { %265 = vpush %v188_v31 }
 0x27f   :  { %s266_s14 = spop %265 }
 0x280   :  { %s213_s15 = smul.f32 0.023809524, %s266_s14 }
 0x282   :  { %215 = sst [smem:[#allocation6]] %s213_s15 }
 0x283   :  { %313 = shalt.err (!%p310_p10)
}
 0x284   :  { %s326_s23 = smov [#allocation6]  }
 0x285   :  { %243 = dma.smem_to_hbm %s326_s23, 16, %s391_s3, [#allocation5]  }
 0x286   :  { %316 = dma.done.wait [#allocation5], 16  }
 0x287   :  { %317 = vsyncadd [#allocation5], 4294967280 }
 0x288   :  { %247 = sfence }
 0x289   :  { %248 = vsyncpa [#allocation4], 1 }
 0x28a   :  { %249 = vsyncpa [#allocation5], 1 }

</bundles_post_ra>
